<compile_context>
chip_gen: v7x
topology: tpu7x:2x2x1
jax: 0.10.0
libtpu: 0.0.40
codegen_flags: <defaults>
</compile_context>

<pallas_src>
import functools

import jax
import jax.numpy as jnp
from jax.experimental import pallas as pl
from jax.experimental.pallas import tpu as pltpu


# ---------------------------------------------------------------------------
# Kernel bodies
# ---------------------------------------------------------------------------
def _beta_weight(v, beta):
    """variance ** beta with static beta, avoiding a generic pow lowering."""
    if beta == 0.0:
        return None
    if beta == 0.5:
        return jnp.sqrt(v)          # EUP rsqrt/sqrt path, cheap
    if beta == 1.0:
        return v
    return jnp.exp(beta * jnp.log(v))


def _beta_nll_tile(m, t, v, *, beta, eps):
    vc = jnp.maximum(v, eps)                       # GaussianNLLLoss clamp
    diff = m - t
    loss = 0.5 * (jnp.log(vc) + diff * diff / vc)
    w = _beta_weight(v, beta)                      # weight uses UNclamped var
    if w is not None:
        loss = loss * w
    return loss


def _beta_nll_reduce_kernel(mean_ref, tgt_ref, var_ref, out_ref, acc_ref, *,
                            beta, eps, scale):
    i = pl.program_id(0)

    @pl.when(i == 0)
    def _init():
        acc_ref[...] = jnp.zeros_like(acc_ref)

    # (block_rows, C) f32 tile; one VPU add per element into the resident
    # accumulator -- no cross-lane work per step.
    acc_ref[...] += _beta_nll_tile(mean_ref[...], tgt_ref[...], var_ref[...],
                                   beta=beta, eps=eps)

    @pl.when(i == pl.num_programs(0) - 1)
    def _finalize():
        # Single cross-lane/sublane reduce + lane-sparse store, once.
        out_ref[...] = (jnp.sum(acc_ref[...]) * scale).reshape(1, 1)


def _beta_nll_elem_kernel(mean_ref, tgt_ref, var_ref, out_ref, *, beta, eps):
    out_ref[...] = _beta_nll_tile(mean_ref[...], tgt_ref[...], var_ref[...],
                                  beta=beta, eps=eps).astype(out_ref.dtype)


# ---------------------------------------------------------------------------
# Wrapper (mirrors BetaNLL.forward)
# ---------------------------------------------------------------------------
def beta_nll(mean, targets, variance, *, beta: float = 0.5,
             reduction: str = "mean", eps: float = 1e-6,
             lane_cols: int = 512, max_block_rows: int = 512):
    if beta < 0.0 or beta > 1.0:
        raise ValueError(
            f"The beta parameter should be in range [0, 1], but got {beta}.")
    if reduction not in ("none", "mean", "sum"):
        raise ValueError(f"{reduction} is not a valid value for reduction.")
    # TODO(synk): GaussianNLLLoss's host-side "var has negative entry" check is
    # not replicated (no clean in-kernel error signalling).

    orig_shape = mean.shape
    orig_dtype = mean.dtype
    n = mean.size
    f32 = jnp.float32
    m = mean.reshape(-1).astype(f32)
    t = targets.reshape(-1).astype(f32)
    v = variance.reshape(-1).astype(f32)

    # Lane-dense 2-D slab: (rows_padded, lane_cols), rows_padded % block_rows == 0.
    rows = pl.cdiv(n, lane_cols)
    block_rows = min(max_block_rows, max(8, ((rows + 7) // 8) * 8))  # mult. of 8
    rows_padded = ((rows + block_rows - 1) // block_rows) * block_rows
    n_padded = rows_padded * lane_cols
    pad = n_padded - n
    if pad:
        # Neutral padding: mean=target=0, variance=1  ->  loss element == 0.
        m = jnp.pad(m, (0, pad))
        t = jnp.pad(t, (0, pad))
        v = jnp.pad(v, (0, pad), constant_values=1.0)

    m2 = m.reshape(rows_padded, lane_cols)
    t2 = t.reshape(rows_padded, lane_cols)
    v2 = v.reshape(rows_padded, lane_cols)

    grid = (rows_padded // block_rows,)
    in_spec = pl.BlockSpec((block_rows, lane_cols), lambda i: (i, 0))

    if reduction == "none":
        out = pl.pallas_call(
            functools.partial(_beta_nll_elem_kernel, beta=beta, eps=eps),
            out_shape=jax.ShapeDtypeStruct((rows_padded, lane_cols), f32),
            grid=grid,
            in_specs=[in_spec, in_spec, in_spec],
            out_specs=pl.BlockSpec((block_rows, lane_cols), lambda i: (i, 0)),
            compiler_params=pltpu.CompilerParams(
                dimension_semantics=("parallel",)),
        )(m2, t2, v2)
        return out.reshape(-1)[:n].reshape(orig_shape).astype(orig_dtype)

    scale = (1.0 / n) if reduction == "mean" else 1.0
    out = pl.pallas_call(
        functools.partial(_beta_nll_reduce_kernel, beta=beta, eps=eps,
                          scale=scale),
        out_shape=jax.ShapeDtypeStruct((1, 1), f32),
        grid=grid,
        in_specs=[in_spec, in_spec, in_spec],
        out_specs=pl.BlockSpec((1, 1), lambda i: (0, 0)),  # resident acc tile
        scratch_shapes=[pltpu.VMEM((block_rows, lane_cols), f32)],
        compiler_params=pltpu.CompilerParams(
            dimension_semantics=("arbitrary",)),
    )(m2, t2, v2)
    return out.reshape(()).astype(orig_dtype)


# ---------------------------------------------------------------------------
# Reference + demo
# ---------------------------------------------------------------------------
def _beta_nll_ref(mean, targets, variance, beta=0.5, reduction="mean",
                  eps=1e-6):
    vc = jnp.maximum(variance, eps)
    loss = 0.5 * (jnp.log(vc) + (mean - targets) ** 2 / vc)
    loss = loss * variance ** beta
    if reduction == "mean":
        return loss.mean()
    if reduction == "sum":
        return loss.sum()
    return loss


if __name__ == "__main__":
    key = jax.random.PRNGKey(0)
    k1, k2, k3 = jax.random.split(key, 3)
    shape = (2, 4, 16, 16)            # batch=2, channels=4, spatial=16x16
    mean = jax.random.normal(k1, shape, dtype=jnp.float32)
    targets = jax.random.normal(k2, shape, dtype=jnp.float32)
    variance = jax.random.uniform(k3, shape, dtype=jnp.float32,
                                  minval=0.05, maxval=2.0)

    # mean reduction (module default)
    out_mean = jax.block_until_ready(beta_nll(mean, targets, variance,
                                              beta=0.5, reduction="mean"))
    ref_mean = _beta_nll_ref(mean, targets, variance, beta=0.5,
                             reduction="mean")
    assert out_mean.shape == ()
    assert jnp.allclose(out_mean, ref_mean, rtol=1e-5, atol=1e-5)

    # sum reduction
    out_sum = jax.block_until_ready(beta_nll(mean, targets, variance,
                                             beta=0.5, reduction="sum"))
    ref_sum = _beta_nll_ref(mean, targets, variance, beta=0.5, reduction="sum")
    assert jnp.allclose(out_sum, ref_sum, rtol=1e-5, atol=1e-4)

    # no reduction (elementwise kernel)
    out_none = jax.block_until_ready(beta_nll(mean, targets, variance,
                                              beta=0.5, reduction="none"))
    ref_none = _beta_nll_ref(mean, targets, variance, beta=0.5,
                             reduction="none")
    assert out_none.shape == shape
    assert jnp.allclose(out_none, ref_none, rtol=1e-5, atol=1e-5)

    # non-special beta exercises the exp(beta*log(v)) path
    out_b = jax.block_until_ready(beta_nll(mean, targets, variance,
                                           beta=0.3, reduction="mean"))
    ref_b = _beta_nll_ref(mean, targets, variance, beta=0.3, reduction="mean")
    assert jnp.allclose(out_b, ref_b, rtol=1e-5, atol=1e-5)

    print("KERNEL_OK")
</pallas_src>

<mosaic_0001>
module attributes {stable_mosaic.version = 11 : i64} {
  func.func @_beta_nll_reduce_kernel(%arg0: i32, %arg1: memref<8x512xf32, #tpu.memory_space<vmem>>, %arg2: memref<8x512xf32, #tpu.memory_space<vmem>>, %arg3: memref<8x512xf32, #tpu.memory_space<vmem>>, %arg4: memref<1x1xf32, #tpu.memory_space<vmem>>, %arg5: memref<8x512xf32, #tpu.memory_space<vmem>>) attributes {dimension_semantics = [#tpu.dimension_semantics<arbitrary>], iteration_bounds = array<i64: 1>, scalar_prefetch = 0 : i64, scratch_operands = 1 : i64, tpu.core_type = #tpu.core_type<tc>, window_params = [{transform_indices = @transform_0, window_bounds = array<i64: 8, 512>}, {transform_indices = @transform_1, window_bounds = array<i64: 8, 512>}, {transform_indices = @transform_2, window_bounds = array<i64: 8, 512>}, {pipeline_mode = #tpu.pipeline_mode<synchronous>, transform_indices = @transform_3, window_bounds = array<i64: 1, 1>}]} {
    %c0_i32 = arith.constant 0 : i32
    %0 = arith.cmpi eq, %arg0, %c0_i32 : i32
    %1 = arith.extui %0 : i1 to i32
    %c0_i32_0 = arith.constant 0 : i32
    %2 = arith.cmpi ne, %1, %c0_i32_0 : i32
    scf.if %2 {
      %cst_13 = arith.constant 0.000000e+00 : f32
      %23 = vector.broadcast %cst_13 : f32 to vector<8x512xf32>
      %c0_14 = arith.constant 0 : index
      %c0_15 = arith.constant 0 : index
      %24 = vector.load %arg5[%c0_14, %c0_15] : memref<8x512xf32, #tpu.memory_space<vmem>>, vector<8x512xf32>
      tpu.vector_store %arg5[%c0_14, %c0_15], %23 {strides = array<i32>} : memref<8x512xf32, #tpu.memory_space<vmem>>, vector<8x512xf32>,
    } else {
    }
    %c0 = arith.constant 0 : index
    %c0_1 = arith.constant 0 : index
    %3 = vector.load %arg5[%c0, %c0_1] : memref<8x512xf32, #tpu.memory_space<vmem>>, vector<8x512xf32>
    %c0_2 = arith.constant 0 : index
    %c0_3 = arith.constant 0 : index
    %4 = vector.load %arg1[%c0_2, %c0_3] : memref<8x512xf32, #tpu.memory_space<vmem>>, vector<8x512xf32>
    %c0_4 = arith.constant 0 : index
    %c0_5 = arith.constant 0 : index
    %5 = vector.load %arg2[%c0_4, %c0_5] : memref<8x512xf32, #tpu.memory_space<vmem>>, vector<8x512xf32>
    %c0_6 = arith.constant 0 : index
    %c0_7 = arith.constant 0 : index
    %6 = vector.load %arg3[%c0_6, %c0_7] : memref<8x512xf32, #tpu.memory_space<vmem>>, vector<8x512xf32>
    %cst = arith.constant 9.99999997E-7 : f32
    %7 = vector.broadcast %cst : f32 to vector<8x512xf32>
    %8 = arith.maximumf %6, %7 : vector<8x512xf32>
    %9 = arith.subf %4, %5 : vector<8x512xf32>
    %10 = math.log %8 : vector<8x512xf32>
    %11 = arith.mulf %9, %9 : vector<8x512xf32>
    %12 = arith.divf %11, %8 : vector<8x512xf32>
    %13 = arith.addf %10, %12 : vector<8x512xf32>
    %cst_8 = arith.constant 5.000000e-01 : f32
    %14 = vector.broadcast %cst_8 : f32 to vector<8x512xf32>
    %15 = arith.mulf %14, %13 : vector<8x512xf32>
    %16 = math.sqrt %6 : vector<8x512xf32>
    %17 = arith.mulf %15, %16 : vector<8x512xf32>
    %18 = arith.addf %3, %17 : vector<8x512xf32>
    %c0_9 = arith.constant 0 : index
    %c0_10 = arith.constant 0 : index
    %19 = vector.load %arg5[%c0_9, %c0_10] : memref<8x512xf32, #tpu.memory_space<vmem>>, vector<8x512xf32>
    tpu.vector_store %arg5[%c0_9, %c0_10], %18 {strides = array<i32>} : memref<8x512xf32, #tpu.memory_space<vmem>>, vector<8x512xf32>,
    %c0_i32_11 = arith.constant 0 : i32
    %20 = arith.cmpi eq, %arg0, %c0_i32_11 : i32
    %21 = arith.extui %20 : i1 to i32
    %c0_i32_12 = arith.constant 0 : i32
    %22 = arith.cmpi ne, %21, %c0_i32_12 : i32
    scf.if %22 {
      %c0_13 = arith.constant 0 : index
      %c0_14 = arith.constant 0 : index
      %23 = vector.load %arg5[%c0_13, %c0_14] : memref<8x512xf32, #tpu.memory_space<vmem>>, vector<8x512xf32>
      %24 = vector.shape_cast %23 : vector<8x512xf32> to vector<1x8x512xf32>
      %cst_15 = arith.constant dense<0.000000e+00> : vector<1xf32>
      %25 = vector.multi_reduction <add>, %24, %cst_15 [1, 2] : vector<1x8x512xf32> to vector<1xf32>
      %26 = vector.shape_cast %25 : vector<1xf32> to vector<1x1x1xf32>
      %27 = vector.extract %26[0, 0, 0] : f32 from vector<1x1x1xf32>
      %cst_16 = arith.constant 4.8828125E-4 : f32
      %28 = arith.mulf %27, %cst_16 : f32
      %29 = vector.broadcast %28 : f32 to vector<1x1xf32>
      %c0_17 = arith.constant 0 : index
      %c0_18 = arith.constant 0 : index
      %30 = vector.load %arg4[%c0_17, %c0_18] : memref<1x1xf32, #tpu.memory_space<vmem>>, vector<1x1xf32>
      tpu.vector_store %arg4[%c0_17, %c0_18], %29 {strides = array<i32>} : memref<1x1xf32, #tpu.memory_space<vmem>>, vector<1x1xf32>,
    } else {
    }
    return
  }
  func.func @transform_0(%arg0: i32) -> (i32, i32) {
    %c0_i32 = arith.constant 0 : i32
    %c0_i32_0 = arith.constant 0 : i32
    return %arg0, %c0_i32 : i32, i32
  }
  func.func @transform_1(%arg0: i32) -> (i32, i32) {
    %c0_i32 = arith.constant 0 : i32
    %c0_i32_0 = arith.constant 0 : i32
    return %arg0, %c0_i32 : i32, i32
  }
  func.func @transform_2(%arg0: i32) -> (i32, i32) {
    %c0_i32 = arith.constant 0 : i32
    %c0_i32_0 = arith.constant 0 : i32
    return %arg0, %c0_i32 : i32, i32
  }
  func.func @transform_3(%arg0: i32) -> (i32, i32) {
    %c0_i32 = arith.constant 0 : i32
    %c0_i32_0 = arith.constant 0 : i32
    %c0_i32_1 = arith.constant 0 : i32
    return %c0_i32, %c0_i32_0 : i32, i32
  }
}

</mosaic_0001>

<bundles_post_ra>
// kernel: tpu_custom_call.1
= control target key start
LH: loop header
LB: loop body
LE: loop exit
PB: predicated region body
PF: predicated region fallthrough
CT: control target
= control target key end

     0   :  { %8 = vsyncpa [#allocation4], 0  ;;  %s435_s0 = inlined_call_operand.hbm [shape: f32[8,512], index: 0, kind: input, shape index: {}]   ;;  %s436_s1 = inlined_call_operand.hbm [shape: f32[8,512], index: 1, kind: input, shape index: {}]   ;;  %s437_s2 = inlined_call_operand.hbm [shape: f32[8,512], index: 2, kind: input, shape index: {}]   ;;  %s438_s3 = inlined_call_operand.hbm [shape: f32[1,1], index: 3, kind: output, shape index: {}]  }
   0x1   :  { %9 = vsyncpa [#allocation7], 0 }
   0x2   :  { %10 = vsyncpa [#allocation5], 0  ;;  %s313_s12 = smov [#allocation6]   ;;  %s314_s14 = smov [#allocation3]  }
   0x3   :  { %s27_s13 = sshll.u32 %s313_s12, 4  ;;  %s17_s15 = sshll.u32 %s314_s14, 4  ;;  %s28_s13 = int_to_ptr.vmem [resolvable:$true] %s27_s13  ;;  %s18_s15 = int_to_ptr.vmem [resolvable:$true] %s17_s15 }
   0x4   :  { %s219_s18 = scalar_lea.hbm %s436_s1, 512 }
   0x5   :  { %p220_p0 = scmp.ne.s32.totalorder %s436_s1, %s219_s18  ;;  %p223_p1 = scmp.lt.u32.totalorder %s219_s18, %s436_s1 }
   0x7   :  { %p225_p2 = pnand %p223_p1, %p220_p0 }
   0x9   :  { %228 = shalt.err (!%p225_p2)
}
   0xa   :  { %s229_s23 = scalar_lea.vmem %s28_s13, 512  ;;  %p234_p4 = scmp.lt.s32.totalorder %s28_s13, %s28_s13 }
   0xb   :  { %p230_p3 = scmp.ne.s32.totalorder %s28_s13, %s229_s23  ;;  %p235_p5 = scmp.lt.s32.totalorder %s229_s23, %s229_s23 }
   0xd   :  { %p236_p6 = por %p235_p5, %p234_p4 }
   0xf   :  { %p237_p7 = pnand %p236_p6, %p230_p3 }
  0x11   :  { %240 = shalt.err (!%p237_p7)
}
  0x12   :  { %30 = dma.hbm_to_vmem [thread:$0]  %s436_s1, 512, %s28_s13, [#allocation7]  }
  0x13   :  { %s241_s28 = scalar_lea.hbm %s435_s0, 512 }
  0x14   :  { %p242_p8 = scmp.ne.s32.totalorder %s435_s0, %s241_s28  ;;  %p245_p9 = scmp.lt.u32.totalorder %s241_s28, %s435_s0 }
  0x16   :  { %p247_p10 = pnand %p245_p9, %p242_p8 }
  0x18   :  { %250 = shalt.err (!%p247_p10)
}
  0x19   :  { %s251_s6 = scalar_lea.vmem %s18_s15, 512  ;;  %p256_p12 = scmp.lt.s32.totalorder %s18_s15, %s18_s15 }
  0x1a   :  { %p252_p11 = scmp.ne.s32.totalorder %s18_s15, %s251_s6  ;;  %p257_p13 = scmp.lt.s32.totalorder %s251_s6, %s251_s6 }
  0x1c   :  { %p258_p0 = por %p257_p13, %p256_p12 }
  0x1e   :  { %p259_p1 = pnand %p258_p0, %p252_p11 }
  0x20   :  { %262 = shalt.err (!%p259_p1)
}
  0x21   :  { %20 = dma.hbm_to_vmem [thread:$0]  %s435_s0, 512, %s18_s15, [#allocation4]  }
  0x22   :  { %s315_s8 = smov [#allocation8]   ;;  %s263_s12 = scalar_lea.hbm %s437_s2, 512 }
  0x23   :  { %s37_s9 = sshll.u32 %s315_s8, 4  ;;  %p264_p2 = scmp.ne.s32.totalorder %s437_s2, %s263_s12  ;;  %s38_s9 = int_to_ptr.vmem [resolvable:$true] %s37_s9 }
  0x24   :  { %p267_p3 = scmp.lt.u32.totalorder %s263_s12, %s437_s2 }
  0x26   :  { %p269_p4 = pnand %p267_p3, %p264_p2 }
  0x28   :  { %272 = shalt.err (!%p269_p4)
}
  0x29   :  { %s273_s18 = scalar_lea.vmem %s38_s9, 512  ;;  %p278_p6 = scmp.lt.s32.totalorder %s38_s9, %s38_s9 }
  0x2a   :  { %p274_p5 = scmp.ne.s32.totalorder %s38_s9, %s273_s18  ;;  %p279_p7 = scmp.lt.s32.totalorder %s273_s18, %s273_s18 }
  0x2c   :  { %p280_p8 = por %p279_p7, %p278_p6 }
  0x2e   :  { %p281_p9 = pnand %p280_p8, %p274_p5 }
  0x30   :  { %284 = shalt.err (!%p281_p9)
}
  0x31   :  { %40 = dma.hbm_to_vmem [thread:$0]  %s437_s2, 512, %s38_s9, [#allocation7]  }
  0x32   :  { %307 = dma.done.wait [#allocation4], 512  }
  0x33   :  { %308 = vsyncadd [#allocation4], 4294966784 }
  0x34   :  { %309 = dma.done.wait [#allocation7], 1024  }
  0x35   :  { %310 = vsyncadd [#allocation7], 4294966272  ;;  %v373_v0 = vld [vmem:[#allocation8] sm:$0xff]  ;;  %v375_v1 = vld [vmem:[#allocation8 + $0x8] sm:$0xff]  ;;  %s316_s2 = smov [#allocation9]   ;;  %vm171_vm8 = vcmask 0  }
  0x36   :  { %v377_v2 = vld [vmem:[#allocation8 + $0x10] sm:$0xff]  ;;  %v379_v3 = vld [vmem:[#allocation8 + $0x18] sm:$0xff]  ;;  %v74_v4 = vmax.f32 %v373_v0, 1e-06  ;;  %195 = vrsqrt.f32 %v373_v0  ;;  %v75_v5 = vmax.f32 %v375_v1, 1e-06 }
  0x37   :  { %v76_v6 = vmax.f32 %v377_v2, 1e-06  ;;  %v77_v7 = vmax.f32 %v379_v3, 1e-06  ;;  %v62_v8 = vld [vmem:[#allocation3] sm:$0xff]  ;;  %v63_v10 = vld [vmem:[#allocation3 + $0x8] sm:$0xff] }
  0x38   :  { %197 = vlog2.f32 %v74_v4  ;;  %v66_v9 = vld [vmem:[#allocation6] sm:$0xff]  ;;  %v64_v11 = vld [vmem:[#allocation3 + $0x10] sm:$0xff]  ;;  %v67_v12 = vld [vmem:[#allocation6 + $0x8] sm:$0xff]  ;;  %vm112_vm0 = vcmp.eq.f32.partialorder %v373_v0, inf  ;;  %vm114_vm1 = vcmp.eq.f32.partialorder %v373_v0, 0.0  ;;  %v115_v33 = vand.u32 2147483648, %v373_v0 }
  0x39   :  { %199 = vlog2.f32 %v75_v5  ;;  %v65_v13 = vld [vmem:[#allocation3 + $0x18] sm:$0xff]  ;;  %v68_v14 = vld [vmem:[#allocation6 + $0x10] sm:$0xff]  ;;  %v78_v16 = vsub.f32 %v62_v8, %v66_v9  ;;  %v79_v18 = vsub.f32 %v63_v10, %v67_v12  ;;  %vm119_vm2 = vcmp.eq.f32.partialorder %v375_v1, inf  ;;  %s179_s19 = sshll.u32 %s316_s2, 4  ;;  %s180_s19 = int_to_ptr.vmem [resolvable:$true] %s179_s19 }
  0x3a   :  { %201 = vlog2.f32 %v76_v6  ;;  %v69_v15 = vld [vmem:[#allocation6 + $0x18] sm:$0xff]  ;;  %v80_v19 = vsub.f32 %v64_v11, %v68_v14  ;;  %vm121_vm3 = vcmp.eq.f32.partialorder %v375_v1, 0.0  ;;  %v122_v41 = vand.u32 2147483648, %v375_v1  ;;  %s285_s22 = scalar_lea.vmem %s180_s19, 16  ;;  %s289_s23 = scalar_lea.vmem %s180_s19, 32 }
  0x3b   :  { %203 = vlog2.f32 %v77_v7  ;;  %v81_v20 = vsub.f32 %v65_v13, %v69_v15  ;;  %v90_v23 = vmul.f32 %v78_v16, %v78_v16  ;;  %v91_v26 = vmul.f32 %v79_v18, %v79_v18  ;;  %p286_p10 = scmp.ne.s32.totalorder %s180_s19, %s285_s22  ;;  %p290_p11 = scmp.lt.s32.totalorder %s180_s19, %s180_s19 }
  0x3c   :  { %205 = vrcp.f32 %v74_v4  ;;  %v92_v29 = vmul.f32 %v80_v19, %v80_v19  ;;  %vm126_vm4 = vcmp.eq.f32.partialorder %v377_v2, inf  ;;  %vm128_vm5 = vcmp.eq.f32.partialorder %v377_v2, 0.0  ;;  %p291_p12 = scmp.lt.s32.totalorder %s289_s23, %s285_s22 }
  0x3d   :  { %207 = vrcp.f32 %v75_v5  ;;  %v93_v30 = vmul.f32 %v81_v20, %v81_v20  ;;  %v129_v45 = vand.u32 2147483648, %v377_v2  ;;  %vm133_vm6 = vcmp.eq.f32.partialorder %v379_v3, inf }
  0x3e   :  { %209 = vrcp.f32 %v76_v6  ;;  %vm135_vm7 = vcmp.eq.f32.partialorder %v379_v3, 0.0  ;;  %v136_v58 = vand.u32 2147483648, %v379_v3  ;;  %p292_p13 = por %p291_p12, %p290_p11 }
  0x3f   :  { %211 = vrcp.f32 %v77_v7 }
  0x40   :  { %v196_v17 = vpop.eup %195  ;;  %213 = vrsqrt.f32 %v375_v1  ;;  %p293_p0 = pnand %p292_p13, %p286_p10 }
  0x41   :  { %215 = vrsqrt.f32 %v377_v2  ;;  %v111_v24 = vmul.f32 %v196_v17, %v373_v0 }
  0x42   :  { %v198_v21 = vpop.eup %197  ;;  %217 = vrsqrt.f32 %v379_v3 }
  0x43   :  { %v200_v22 = vpop.eup %199  ;;  %v83_v28 = vmul.f32 0.6931472, %v198_v21  ;;  %v113_v37 = vsel %vm112_vm0, %v373_v0, %v111_v24 }
  0x44   :  { %v202_v25 = vpop.eup %201  ;;  %v85_v32 = vmul.f32 0.6931472, %v200_v22  ;;  %v116_v49 = vsel %vm114_vm1, %v115_v33, %v113_v37 }
  0x45   :  { %v204_v27 = vpop.eup %203  ;;  %v87_v35 = vmul.f32 0.6931472, %v202_v25 }
  0x46   :  { %v206_v31 = vpop.eup %205  ;;  %v89_v39 = vmul.f32 0.6931472, %v204_v27 }
  0x47   :  { %v208_v34 = vpop.eup %207  ;;  %v95_v36 = vmul.f32 %v206_v31, %v90_v23 }
  0x48   :  { %v210_v38 = vpop.eup %209  ;;  %v97_v40 = vmul.f32 %v208_v34, %v91_v26 }
  0x49   :  { %v212_v42 = vpop.eup %211  ;;  %v99_v43 = vmul.f32 %v210_v38, %v92_v29  ;;  %v102_v44 = vadd.f32 %v95_v36, %v83_v28 }
  0x4a   :  { %v214_v46 = vpop.eup %213  ;;  %v101_v47 = vmul.f32 %v212_v42, %v93_v30  ;;  %v103_v48 = vadd.f32 %v97_v40, %v85_v32 }
  0x4b   :  { %v216_v50 = vpop.eup %215  ;;  %v104_v51 = vadd.f32 %v99_v43, %v87_v35  ;;  %v106_v52 = vmul.f32 0.5, %v102_v44  ;;  %v118_v53 = vmul.f32 %v214_v46, %v375_v1 }
  0x4c   :  { %v218_v54 = vpop.eup %217  ;;  %v105_v55 = vadd.f32 %v101_v47, %v89_v39  ;;  %v107_v56 = vmul.f32 0.5, %v103_v48  ;;  %v125_v57 = vmul.f32 %v216_v50, %v377_v2 }
  0x4d   :  { %v108_v59 = vmul.f32 0.5, %v104_v51  ;;  %v120_v60 = vsel %vm119_vm2, %v375_v1, %v118_v53  ;;  %v132_v61 = vmul.f32 %v218_v54, %v379_v3  ;;  %v138_v62 = vmul.f32 %v116_v49, %v106_v52 }
  0x4e   :  { %v109_v63 = vmul.f32 0.5, %v105_v55  ;;  %v123_v0 = vsel %vm121_vm3, %v122_v41, %v120_v60  ;;  %v127_v4 = vsel %vm126_vm4, %v377_v2, %v125_v57 }
  0x4f   :  { %v130_v5 = vsel %vm128_vm5, %v129_v45, %v127_v4  ;;  %v134_v6 = vsel %vm133_vm6, %v379_v3, %v132_v61  ;;  %v139_v7 = vmul.f32 %v123_v0, %v107_v56 }
  0x50   :  { %v137_v8 = vsel %vm135_vm7, %v136_v58, %v134_v6  ;;  %v140_v9 = vmul.f32 %v130_v5, %v108_v59 }
  0x51   :  { %v141_v10 = vmul.f32 %v137_v8, %v109_v63  ;;  %v157_v11 = vadd.f32 %v139_v7, %v138_v62 }
  0x53   :  { %v158_v1 = vadd.f32 %v157_v11, %v140_v9 }
  0x55   :  { %v159_v12 = vadd.f32 %v158_v1, %v141_v10 }
  0x57   :  { %160 = vadd.xlane.f32.xlu0 %v159_v12 }
  0xe4   :  { %v161_v13 = vpop.xlane.xlu0 %160 }
  0xe5   :  { %v162_v14 = vrot.slane %v161_v13, 4 }
  0xe7   :  { %v163_v15 = vadd.f32 %v162_v14, %v161_v13 }
  0xe9   :  { %v164_v16 = vrot.slane %v163_v15, 2 }
  0xeb   :  { %v165_v2 = vadd.f32 %v164_v16, %v163_v15 }
  0xed   :  { %v166_v17 = vrot.slane %v165_v2, 1 }
  0xef   :  { %v167_v18 = vadd.f32 %v166_v17, %v165_v2 }
  0xf1   :  { %189 = vpush %v167_v18 }
 0x122   :  { %s190_s20 = spop %189 }
 0x123   :  { %s169_s21 = smul.f32 0.00048828125, %s190_s20 }
 0x125   :  { %v170_v3 = vstv %s169_s21 }
 0x126   :  { %172 = vst.msk [vmem:[#allocation9] sm:$0x1] %vm171_vm8, %v170_v3 }
 0x127   :  { %296 = shalt.err (!%p293_p0)
}
 0x128   :  { %s297_s26 = scalar_lea.hbm %s438_s3, 16 }
 0x129   :  { %p298_p1 = scmp.ne.s32.totalorder %s438_s3, %s297_s26  ;;  %p301_p2 = scmp.lt.u32.totalorder %s297_s26, %s438_s3 }
 0x12b   :  { %p303_p3 = pnand %p301_p2, %p298_p1 }
 0x12d   :  { %306 = shalt.err (!%p303_p3)
}
 0x12e   :  { %182 = dma.vmem_to_hbm [thread:$0]  %s180_s19, 16, %s438_s3, [#allocation5]  }
 0x12f   :  { %311 = dma.done.wait [#allocation5], 16  }
 0x130   :  { %312 = vsyncadd [#allocation5], 4294967280 }
 0x131   :  { %186 = vsyncpa [#allocation4], 1 }
 0x132   :  { %187 = vsyncpa [#allocation7], 1 }
 0x133   :  { %188 = vsyncpa [#allocation5], 1 }

</bundles_post_ra>
